<compile_context>
chip_gen: v6e
topology: v6e:2x2x1
jax: 0.10.0
libtpu: 0.0.40
codegen_flags: <defaults>
</compile_context>

<pallas_src>
import functools

import jax
import jax.numpy as jnp
from jax.experimental import pallas as pl
from jax.experimental.pallas import tpu as pltpu

EPS = 1e-5
SLAB_DTYPE = jnp.bfloat16  # MXU operand dtype for the im2col slab / weights


def _highres_block_kernel(x_ref, w1_ref, w2_ref, o_ref, slab_ref, *, H, W):
    # x_ref   : (1, Cin, H*W)       f32   channels on sublanes, spatial on lanes
    # w1_ref  : (Cout, 9*Cin + 1)   bf16  taps (row = (ky*3+kx)*C+ci) + bias column
    # w2_ref  : (Cout, 9*Cout + 1)  bf16
    # o_ref   : (1, Cout, H*W)      f32   lane-dense output block
    # slab_ref: (9*Cmax + 1, H*W)   bf16  shared write-only im2col scratch
    Cin = x_ref.shape[1]
    Cout = o_ref.shape[1]
    HW = H * W

    # Column-border masks over the flattened spatial axis (lane p = h*W + w).
    lane = jax.lax.broadcasted_iota(jnp.int32, (1, HW), 1)
    col = lane % W
    keep_l = col > 0            # lane may pull from column w-1
    keep_r = col < (W - 1)      # lane may pull from column w+1

    def instance_norm_relu(a):
        # One-pass stats over the lane-dense spatial axis (biased var, eps=1e-5).
        # NOTE: E[x^2]-E[x]^2 can cancel for large per-channel means; acceptable
        # at these value scales (matches observed ~1e-3 abs error vs. reference).
        inv_n = 1.0 / HW
        s = jnp.sum(a, axis=1, keepdims=True)
        ss = jnp.sum(a * a, axis=1, keepdims=True)
        mean = s * inv_n
        var = ss * inv_n - mean * mean
        return jnp.maximum((a - mean) * jax.lax.rsqrt(var + EPS), 0.0)

    def conv3x3_bias(a, w_ref):
        # im2col into the bf16 slab (cast on write): slab row (ky*3+kx)*C + c at
        # lane p = h*W + w holds a[c, (h+ky-1)*W + (w+kx-1)] (zero outside the
        # image); row 9C is all-ones (bias). Then ONE MXU matmul.
        C = a.shape[0]
        # kx trio kept in registers (f32). pltpu.roll requires non-negative
        # shifts, so -1 / -W are expressed as HW-1 / HW-W (cyclic); wrapped
        # lanes are exactly the masked/zeroed border lanes.
        left = jnp.where(keep_l, pltpu.roll(a, shift=1, axis=1), 0.0)        # w-1
        right = jnp.where(keep_r, pltpu.roll(a, shift=HW - 1, axis=1), 0.0)  # w+1
        trio = (left, a, right)
        for t, blk in enumerate(trio):
            # ky=0 (h-1): unmasked roll; first image row zeroed below.
            slab_ref[t * C:(t + 1) * C, :] = pltpu.roll(
                blk, shift=W, axis=1).astype(SLAB_DTYPE)
            # ky=1 (h): centre.
            slab_ref[(3 + t) * C:(4 + t) * C, :] = blk.astype(SLAB_DTYPE)
            # ky=2 (h+1): unmasked roll; last image row zeroed below.
            slab_ref[(6 + t) * C:(7 + t) * C, :] = pltpu.roll(
                blk, shift=HW - W, axis=1).astype(SLAB_DTYPE)
        # Row-border handling: two small masked stores instead of full-width selects.
        slab_ref[0:3 * C, 0:W] = jnp.zeros((3 * C, W), SLAB_DTYPE)
        slab_ref[6 * C:9 * C, (H - 1) * W:HW] = jnp.zeros((3 * C, W), SLAB_DTYPE)
        # Constant-1 row pairs with the bias column of the weight matrix.
        slab_ref[9 * C:9 * C + 1, :] = jnp.ones((1, HW), SLAB_DTYPE)
        a9 = slab_ref[0:9 * C + 1, :]                              # (9C+1, HW) bf16
        return jnp.dot(w_ref[...], a9, preferred_element_type=jnp.float32)

    # layer 1: InstanceNorm -> ReLU -> Conv3x3 (Cin -> Cout, bias fused)
    y1 = conv3x3_bias(instance_norm_relu(x_ref[0].astype(jnp.float32)), w1_ref)
    # layer 2: InstanceNorm -> ReLU -> Conv3x3 (Cout -> Cout, bias fused)
    y2 = conv3x3_bias(instance_norm_relu(y1), w2_ref)

    # Residual branch (ChannelMatching.PAD): x lands in output channels
    # [pad_1, pad_1 + Cin). Three non-overlapping stores; x reloaded from VMEM
    # here instead of being held live across both convs.
    if Cin == Cout:
        o_ref[0] = (y2 + x_ref[0].astype(jnp.float32)).astype(o_ref.dtype)
    else:
        pad_1 = (Cout - Cin) // 2
        if pad_1 > 0:
            o_ref[0, 0:pad_1, :] = y2[0:pad_1, :].astype(o_ref.dtype)
        o_ref[0, pad_1:pad_1 + Cin, :] = (
            y2[pad_1:pad_1 + Cin, :] + x_ref[0].astype(jnp.float32)
        ).astype(o_ref.dtype)
        if pad_1 + Cin < Cout:
            o_ref[0, pad_1 + Cin:Cout, :] = y2[pad_1 + Cin:Cout, :].astype(o_ref.dtype)


def highres_block(x_nchw, w1, b1, w2, b2):
    """x_nchw: (N, Cin, H, W) f32. w1/w2 in HWIO layout, b1/b2 shape (Cout,)."""
    N, Cin, H, W = x_nchw.shape
    Cout = w1.shape[-1]
    HW = H * W
    assert Cin <= Cout, "channel_matching='pad' requires in_channels <= out_channels"

    # Free reshapes only — no NCHW<->NHWC transposes touching HBM.
    x = x_nchw.reshape(N, Cin, HW)

    # Pre-fold conv weights to (Cout, 9*C) bf16 matmul operands and append the
    # bias as an extra column (pairs with the constant-1 slab row; K = 9C+1).
    w1m = jnp.concatenate(
        [jnp.transpose(w1.reshape(9 * Cin, Cout)), b1.reshape(Cout, 1)],
        axis=1).astype(SLAB_DTYPE)
    w2m = jnp.concatenate(
        [jnp.transpose(w2.reshape(9 * Cout, Cout)), b2.reshape(Cout, 1)],
        axis=1).astype(SLAB_DTYPE)

    kernel = functools.partial(_highres_block_kernel, H=H, W=W)

    out = pl.pallas_call(
        kernel,
        out_shape=jax.ShapeDtypeStruct((N, Cout, HW), x_nchw.dtype),
        grid_spec=pltpu.PrefetchScalarGridSpec(
            num_scalar_prefetch=0,
            grid=(N,),
            in_specs=[
                pl.BlockSpec((1, Cin, HW), lambda n: (n, 0, 0)),
                pl.BlockSpec((Cout, 9 * Cin + 1), lambda n: (0, 0)),
                pl.BlockSpec((Cout, 9 * Cout + 1), lambda n: (0, 0)),
            ],
            out_specs=pl.BlockSpec((1, Cout, HW), lambda n: (n, 0, 0)),
            scratch_shapes=[
                pltpu.VMEM((9 * max(Cin, Cout) + 1, HW), SLAB_DTYPE)],
        ),
        compiler_params=pltpu.CompilerParams(
            dimension_semantics=("parallel",)),
    )(x, w1m, w2m)

    return out.reshape(N, Cout, H, W)


def _reference_forward(x_nchw, w1, b1, w2, b2):
    """Pure-JAX f32 reference matching the PyTorch HighResBlock forward."""
    x = jnp.transpose(x_nchw, (0, 2, 3, 1))  # NHWC
    Cin, Cout = x.shape[-1], w1.shape[-1]
    dn = ("NHWC", "HWIO", "NHWC")

    def inorm(a):
        mean = jnp.mean(a, axis=(1, 2), keepdims=True)
        var = jnp.mean((a - mean) ** 2, axis=(1, 2), keepdims=True)
        return (a - mean) * jax.lax.rsqrt(var + EPS)

    a1 = jax.nn.relu(inorm(x))
    y1 = jax.lax.conv_general_dilated(a1, w1, (1, 1), "SAME",
                                      dimension_numbers=dn) + b1.reshape(1, 1, 1, Cout)
    a2 = jax.nn.relu(inorm(y1))
    y2 = jax.lax.conv_general_dilated(a2, w2, (1, 1), "SAME",
                                      dimension_numbers=dn) + b2.reshape(1, 1, 1, Cout)
    pad_1 = (Cout - Cin) // 2
    pad_2 = Cout - Cin - pad_1
    res = jnp.pad(x, ((0, 0), (0, 0), (0, 0), (pad_1, pad_2)))
    return jnp.transpose(y2 + res, (0, 3, 1, 2))


if __name__ == "__main__":
    N, Cin, Cout, H, W = 2, 4, 8, 16, 16

    key = jax.random.PRNGKey(0)
    kx, kw1, kb1, kw2, kb2 = jax.random.split(key, 5)

    x = jax.random.normal(kx, (N, Cin, H, W), jnp.float32)
    # deterministic synthetic parameters (HWIO conv weights, (Cout,) biases)
    w1 = 0.1 * jax.random.normal(kw1, (3, 3, Cin, Cout), jnp.float32)
    b1 = 0.1 * jax.random.normal(kb1, (Cout,), jnp.float32)
    w2 = 0.1 * jax.random.normal(kw2, (3, 3, Cout, Cout), jnp.float32)
    b2 = 0.1 * jax.random.normal(kb2, (Cout,), jnp.float32)

    out = jax.block_until_ready(highres_block(x, w1, b1, w2, b2))
    ref = jax.block_until_ready(_reference_forward(x, w1, b1, w2, b2))

    assert out.shape == (N, Cout, H, W), out.shape
    # Tolerance reflects bf16 MXU operands / bf16-folded bias (f32 accumulation,
    # f32 InstanceNorm); observed error is ~1e-3 absolute at these value scales.
    err = float(jnp.max(jnp.abs(out - ref)))
    assert err < 2e-2, err

    print("KERNEL_OK")
</pallas_src>

<mosaic_0001>
module attributes {stable_mosaic.version = 11 : i64} {
  func.func @_highres_block_kernel(%arg0: i32, %arg1: memref<1x4x256xf32, #tpu.memory_space<vmem>>, %arg2: memref<8x37xbf16, #tpu.memory_space<vmem>>, %arg3: memref<8x73xbf16, #tpu.memory_space<vmem>>, %arg4: memref<1x8x256xf32, #tpu.memory_space<vmem>>, %arg5: memref<73x256xbf16, #tpu.memory_space<vmem>>) attributes {dimension_semantics = [#tpu.dimension_semantics<parallel>], iteration_bounds = array<i64: 2>, scalar_prefetch = 0 : i64, scratch_operands = 1 : i64, tpu.core_type = #tpu.core_type<tc>, window_params = [{transform_indices = @transform_0, window_bounds = array<i64: 1, 4, 256>}, {pipeline_mode = #tpu.pipeline_mode<synchronous>, transform_indices = @transform_1, window_bounds = array<i64: 8, 37>}, {pipeline_mode = #tpu.pipeline_mode<synchronous>, transform_indices = @transform_2, window_bounds = array<i64: 8, 73>}, {transform_indices = @transform_3, window_bounds = array<i64: 1, 8, 256>}]} {
    %0 = tpu.iota {dimensions = array<i32: 1>} : vector<1x256xi32>
    %c16_i32 = arith.constant 16 : i32
    %c0_i32 = arith.constant 0 : i32
    %1 = arith.cmpi eq, %c16_i32, %c0_i32 : i32
    %c1_i32 = arith.constant 1 : i32
    %2 = arith.select %1, %c1_i32, %c16_i32 : i32
    %3 = vector.broadcast %2 : i32 to vector<1x256xi32>
    %4 = arith.remsi %0, %3 : vector<1x256xi32>
    %c0_i32_0 = arith.constant 0 : i32
    %5 = vector.broadcast %c0_i32_0 : i32 to vector<1x256xi32>
    %6 = arith.cmpi ne, %4, %5 : vector<1x256xi32>
    %c0_i32_1 = arith.constant 0 : i32
    %7 = vector.broadcast %c0_i32_1 : i32 to vector<1x256xi32>
    %8 = arith.cmpi slt, %4, %7 : vector<1x256xi32>
    %c0_i32_2 = arith.constant 0 : i32
    %9 = arith.cmpi slt, %2, %c0_i32_2 : i32
    %10 = vector.broadcast %9 : i1 to vector<1x256xi1>
    %11 = vector.broadcast %10 : vector<1x256xi1> to vector<1x256xi1>
    %12 = arith.xori %8, %11 : vector<1x256xi1>
    %13 = arith.andi %12, %6 : vector<1x256xi1>
    %14 = vector.broadcast %2 : i32 to vector<1x256xi32>
    %15 = arith.addi %4, %14 : vector<1x256xi32>
    %16 = arith.select %13, %15, %4 : vector<1x256xi1>, vector<1x256xi32>
    %c0_i32_3 = arith.constant 0 : i32
    %17 = vector.broadcast %c0_i32_3 : i32 to vector<1x256xi32>
    %18 = arith.cmpi sgt, %16, %17 : vector<1x256xi32>
    %c15_i32 = arith.constant 15 : i32
    %19 = vector.broadcast %c15_i32 : i32 to vector<1x256xi32>
    %20 = arith.cmpi slt, %16, %19 : vector<1x256xi32>
    %c0 = arith.constant 0 : index
    %c0_4 = arith.constant 0 : index
    %c0_5 = arith.constant 0 : index
    %21 = vector.load %arg1[%c0, %c0_4, %c0_5] : memref<1x4x256xf32, #tpu.memory_space<vmem>>, vector<1x4x256xf32>
    %22 = vector.shape_cast %21 : vector<1x4x256xf32> to vector<4x256xf32>
    %cst = arith.constant dense<0.000000e+00> : vector<4xf32>
    %23 = vector.multi_reduction <add>, %22, %cst [1] : vector<4x256xf32> to vector<4xf32>
    %24 = vector.shape_cast %23 : vector<4xf32> to vector<4x1xf32>
    %25 = arith.mulf %22, %22 : vector<4x256xf32>
    %cst_6 = arith.constant dense<0.000000e+00> : vector<4xf32>
    %26 = vector.multi_reduction <add>, %25, %cst_6 [1] : vector<4x256xf32> to vector<4xf32>
    %27 = vector.shape_cast %26 : vector<4xf32> to vector<4x1xf32>
    %cst_7 = arith.constant 3.906250e-03 : f32
    %28 = vector.broadcast %cst_7 : f32 to vector<4x1xf32>
    %29 = arith.mulf %24, %28 : vector<4x1xf32>
    %cst_8 = arith.constant 3.906250e-03 : f32
    %30 = vector.broadcast %cst_8 : f32 to vector<4x1xf32>
    %31 = arith.mulf %27, %30 : vector<4x1xf32>
    %32 = arith.mulf %29, %29 : vector<4x1xf32>
    %33 = arith.subf %31, %32 : vector<4x1xf32>
    %34 = vector.broadcast %29 : vector<4x1xf32> to vector<4x256xf32>
    %35 = arith.subf %22, %34 : vector<4x256xf32>
    %cst_9 = arith.constant 9.99999974E-6 : f32
    %36 = vector.broadcast %cst_9 : f32 to vector<4x1xf32>
    %37 = arith.addf %33, %36 : vector<4x1xf32>
    %38 = math.rsqrt %37 : vector<4x1xf32>
    %39 = vector.broadcast %38 : vector<4x1xf32> to vector<4x256xf32>
    %40 = arith.mulf %35, %39 : vector<4x256xf32>
    %cst_10 = arith.constant 0.000000e+00 : f32
    %41 = vector.broadcast %cst_10 : f32 to vector<4x256xf32>
    %42 = arith.maximumf %40, %41 : vector<4x256xf32>
    %c1_i32_11 = arith.constant 1 : i32
    %43 = tpu.dynamic_rotate %42 by %c1_i32_11 dim 1 : vector<4x256xf32>, i32 -> vector<4x256xf32>
    %cst_12 = arith.constant 0.000000e+00 : f32
    %44 = vector.shape_cast %18 : vector<1x256xi1> to vector<1x256xi1>
    %45 = vector.broadcast %44 : vector<1x256xi1> to vector<4x256xi1>
    %46 = vector.broadcast %cst_12 : f32 to vector<4x256xf32>
    %47 = arith.select %45, %43, %46 : vector<4x256xi1>, vector<4x256xf32>
    %c255_i32 = arith.constant 255 : i32
    %48 = tpu.dynamic_rotate %42 by %c255_i32 dim 1 : vector<4x256xf32>, i32 -> vector<4x256xf32>
    %cst_13 = arith.constant 0.000000e+00 : f32
    %49 = vector.shape_cast %20 : vector<1x256xi1> to vector<1x256xi1>
    %50 = vector.broadcast %49 : vector<1x256xi1> to vector<4x256xi1>
    %51 = vector.broadcast %cst_13 : f32 to vector<4x256xf32>
    %52 = arith.select %50, %48, %51 : vector<4x256xi1>, vector<4x256xf32>
    %c16_i32_14 = arith.constant 16 : i32
    %53 = tpu.dynamic_rotate %47 by %c16_i32_14 dim 1 : vector<4x256xf32>, i32 -> vector<4x256xf32>
    %54 = arith.truncf %53 : vector<4x256xf32> to vector<4x256xbf16>
    %c0_15 = arith.constant 0 : index
    %c0_16 = arith.constant 0 : index
    %55 = vector.load %arg5[%c0_15, %c0_16] : memref<73x256xbf16, #tpu.memory_space<vmem>>, vector<4x256xbf16>
    tpu.vector_store %arg5[%c0_15, %c0_16], %54 {strides = array<i32>} : memref<73x256xbf16, #tpu.memory_space<vmem>>, vector<4x256xbf16>,
    %56 = arith.truncf %47 : vector<4x256xf32> to vector<4x256xbf16>
    %c12 = arith.constant 12 : index
    %c0_17 = arith.constant 0 : index
    %57 = vector.load %arg5[%c12, %c0_17] : memref<73x256xbf16, #tpu.memory_space<vmem>>, vector<4x256xbf16>
    tpu.vector_store %arg5[%c12, %c0_17], %56 {strides = array<i32>} : memref<73x256xbf16, #tpu.memory_space<vmem>>, vector<4x256xbf16>,
    %c240_i32 = arith.constant 240 : i32
    %58 = tpu.dynamic_rotate %47 by %c240_i32 dim 1 : vector<4x256xf32>, i32 -> vector<4x256xf32>
    %59 = arith.truncf %58 : vector<4x256xf32> to vector<4x256xbf16>
    %c24 = arith.constant 24 : index
    %c0_18 = arith.constant 0 : index
    %60 = vector.load %arg5[%c24, %c0_18] : memref<73x256xbf16, #tpu.memory_space<vmem>>, vector<4x256xbf16>
    tpu.vector_store %arg5[%c24, %c0_18], %59 {strides = array<i32>} : memref<73x256xbf16, #tpu.memory_space<vmem>>, vector<4x256xbf16>,
    %c16_i32_19 = arith.constant 16 : i32
    %61 = tpu.dynamic_rotate %42 by %c16_i32_19 dim 1 : vector<4x256xf32>, i32 -> vector<4x256xf32>
    %62 = arith.truncf %61 : vector<4x256xf32> to vector<4x256xbf16>
    %c4 = arith.constant 4 : index
    %c0_20 = arith.constant 0 : index
    %63 = vector.load %arg5[%c4, %c0_20] : memref<73x256xbf16, #tpu.memory_space<vmem>>, vector<4x256xbf16>
    tpu.vector_store %arg5[%c4, %c0_20], %62 {strides = array<i32>} : memref<73x256xbf16, #tpu.memory_space<vmem>>, vector<4x256xbf16>,
    %64 = arith.truncf %42 : vector<4x256xf32> to vector<4x256xbf16>
    %c16 = arith.constant 16 : index
    %c0_21 = arith.constant 0 : index
    %65 = vector.load %arg5[%c16, %c0_21] : memref<73x256xbf16, #tpu.memory_space<vmem>>, vector<4x256xbf16>
    tpu.vector_store %arg5[%c16, %c0_21], %64 {strides = array<i32>} : memref<73x256xbf16, #tpu.memory_space<vmem>>, vector<4x256xbf16>,
    %c240_i32_22 = arith.constant 240 : i32
    %66 = tpu.dynamic_rotate %42 by %c240_i32_22 dim 1 : vector<4x256xf32>, i32 -> vector<4x256xf32>
    %67 = arith.truncf %66 : vector<4x256xf32> to vector<4x256xbf16>
    %c28 = arith.constant 28 : index
    %c0_23 = arith.constant 0 : index
    %68 = vector.load %arg5[%c28, %c0_23] : memref<73x256xbf16, #tpu.memory_space<vmem>>, vector<4x256xbf16>
    tpu.vector_store %arg5[%c28, %c0_23], %67 {strides = array<i32>} : memref<73x256xbf16, #tpu.memory_space<vmem>>, vector<4x256xbf16>,
    %c16_i32_24 = arith.constant 16 : i32
    %69 = tpu.dynamic_rotate %52 by %c16_i32_24 dim 1 : vector<4x256xf32>, i32 -> vector<4x256xf32>
    %70 = arith.truncf %69 : vector<4x256xf32> to vector<4x256xbf16>
    %c8 = arith.constant 8 : index
    %c0_25 = arith.constant 0 : index
    %71 = vector.load %arg5[%c8, %c0_25] : memref<73x256xbf16, #tpu.memory_space<vmem>>, vector<4x256xbf16>
    tpu.vector_store %arg5[%c8, %c0_25], %70 {strides = array<i32>} : memref<73x256xbf16, #tpu.memory_space<vmem>>, vector<4x256xbf16>,
    %72 = arith.truncf %52 : vector<4x256xf32> to vector<4x256xbf16>
    %c20 = arith.constant 20 : index
    %c0_26 = arith.constant 0 : index
    %73 = vector.load %arg5[%c20, %c0_26] : memref<73x256xbf16, #tpu.memory_space<vmem>>, vector<4x256xbf16>
    tpu.vector_store %arg5[%c20, %c0_26], %72 {strides = array<i32>} : memref<73x256xbf16, #tpu.memory_space<vmem>>, vector<4x256xbf16>,
    %c240_i32_27 = arith.constant 240 : i32
    %74 = tpu.dynamic_rotate %52 by %c240_i32_27 dim 1 : vector<4x256xf32>, i32 -> vector<4x256xf32>
    %75 = arith.truncf %74 : vector<4x256xf32> to vector<4x256xbf16>
    %c32 = arith.constant 32 : index
    %c0_28 = arith.constant 0 : index
    %76 = vector.load %arg5[%c32, %c0_28] : memref<73x256xbf16, #tpu.memory_space<vmem>>, vector<4x256xbf16>
    tpu.vector_store %arg5[%c32, %c0_28], %75 {strides = array<i32>} : memref<73x256xbf16, #tpu.memory_space<vmem>>, vector<4x256xbf16>,
    %cst_29 = arith.constant 0.000000e+00 : bf16
    %77 = vector.broadcast %cst_29 : bf16 to vector<12x16xbf16>
    %c0_30 = arith.constant 0 : index
    %c0_31 = arith.constant 0 : index
    %78 = vector.load %arg5[%c0_30, %c0_31] : memref<73x256xbf16, #tpu.memory_space<vmem>>, vector<12x16xbf16>
    tpu.vector_store %arg5[%c0_30, %c0_31], %77 {strides = array<i32>} : memref<73x256xbf16, #tpu.memory_space<vmem>>, vector<12x16xbf16>,
    %cst_32 = arith.constant 0.000000e+00 : bf16
    %79 = vector.broadcast %cst_32 : bf16 to vector<12x16xbf16>
    %c24_33 = arith.constant 24 : index
    %c240 = arith.constant 240 : index
    %80 = vector.load %arg5[%c24_33, %c240] : memref<73x256xbf16, #tpu.memory_space<vmem>>, vector<12x16xbf16>
    tpu.vector_store %arg5[%c24_33, %c240], %79 {strides = array<i32>} : memref<73x256xbf16, #tpu.memory_space<vmem>>, vector<12x16xbf16>,
    %cst_34 = arith.constant 1.000000e+00 : bf16
    %81 = vector.broadcast %cst_34 : bf16 to vector<1x256xbf16>
    %c36 = arith.constant 36 : index
    %c0_35 = arith.constant 0 : index
    %82 = vector.load %arg5[%c36, %c0_35] : memref<73x256xbf16, #tpu.memory_space<vmem>>, vector<1x256xbf16>
    tpu.vector_store %arg5[%c36, %c0_35], %81 {strides = array<i32>} : memref<73x256xbf16, #tpu.memory_space<vmem>>, vector<1x256xbf16>,
    %c0_36 = arith.constant 0 : index
    %c0_37 = arith.constant 0 : index
    %83 = vector.load %arg5[%c0_36, %c0_37] : memref<73x256xbf16, #tpu.memory_space<vmem>>, vector<37x256xbf16>
    %c0_38 = arith.constant 0 : index
    %c0_39 = arith.constant 0 : index
    %84 = vector.load %arg2[%c0_38, %c0_39] : memref<8x37xbf16, #tpu.memory_space<vmem>>, vector<8x37xbf16>
    %cst_40 = arith.constant dense<0.000000e+00> : vector<8x256xf32>
    %85 = tpu.matmul %84, %83, %cst_40 {dimension_numbers = #tpu.dot_dimension_numbers<[1], [0], [0], [1], [0, 0, 1, 1], [], []>} : vector<8x37xbf16>, vector<37x256xbf16>, vector<8x256xf32> -> vector<8x256xf32>
    %cst_41 = arith.constant dense<0.000000e+00> : vector<8xf32>
    %86 = vector.multi_reduction <add>, %85, %cst_41 [1] : vector<8x256xf32> to vector<8xf32>
    %87 = vector.shape_cast %86 : vector<8xf32> to vector<8x1xf32>
    %88 = arith.mulf %85, %85 : vector<8x256xf32>
    %cst_42 = arith.constant dense<0.000000e+00> : vector<8xf32>
    %89 = vector.multi_reduction <add>, %88, %cst_42 [1] : vector<8x256xf32> to vector<8xf32>
    %90 = vector.shape_cast %89 : vector<8xf32> to vector<8x1xf32>
    %cst_43 = arith.constant 3.906250e-03 : f32
    %91 = vector.broadcast %cst_43 : f32 to vector<8x1xf32>
    %92 = arith.mulf %87, %91 : vector<8x1xf32>
    %cst_44 = arith.constant 3.906250e-03 : f32
    %93 = vector.broadcast %cst_44 : f32 to vector<8x1xf32>
    %94 = arith.mulf %90, %93 : vector<8x1xf32>
    %95 = arith.mulf %92, %92 : vector<8x1xf32>
    %96 = arith.subf %94, %95 : vector<8x1xf32>
    %97 = vector.broadcast %92 : vector<8x1xf32> to vector<8x256xf32>
    %98 = arith.subf %85, %97 : vector<8x256xf32>
    %cst_45 = arith.constant 9.99999974E-6 : f32
    %99 = vector.broadcast %cst_45 : f32 to vector<8x1xf32>
    %100 = arith.addf %96, %99 : vector<8x1xf32>
    %101 = math.rsqrt %100 : vector<8x1xf32>
    %102 = vector.broadcast %101 : vector<8x1xf32> to vector<8x256xf32>
    %103 = arith.mulf %98, %102 : vector<8x256xf32>
    %cst_46 = arith.constant 0.000000e+00 : f32
    %104 = vector.broadcast %cst_46 : f32 to vector<8x256xf32>
    %105 = arith.maximumf %103, %104 : vector<8x256xf32>
    %c1_i32_47 = arith.constant 1 : i32
    %106 = tpu.dynamic_rotate %105 by %c1_i32_47 dim 1 : vector<8x256xf32>, i32 -> vector<8x256xf32>
    %cst_48 = arith.constant 0.000000e+00 : f32
    %107 = vector.shape_cast %18 : vector<1x256xi1> to vector<1x256xi1>
    %108 = vector.broadcast %107 : vector<1x256xi1> to vector<8x256xi1>
    %109 = vector.broadcast %cst_48 : f32 to vector<8x256xf32>
    %110 = arith.select %108, %106, %109 : vector<8x256xi1>, vector<8x256xf32>
    %c255_i32_49 = arith.constant 255 : i32
    %111 = tpu.dynamic_rotate %105 by %c255_i32_49 dim 1 : vector<8x256xf32>, i32 -> vector<8x256xf32>
    %cst_50 = arith.constant 0.000000e+00 : f32
    %112 = vector.shape_cast %20 : vector<1x256xi1> to vector<1x256xi1>
    %113 = vector.broadcast %112 : vector<1x256xi1> to vector<8x256xi1>
    %114 = vector.broadcast %cst_50 : f32 to vector<8x256xf32>
    %115 = arith.select %113, %111, %114 : vector<8x256xi1>, vector<8x256xf32>
    %c16_i32_51 = arith.constant 16 : i32
    %116 = tpu.dynamic_rotate %110 by %c16_i32_51 dim 1 : vector<8x256xf32>, i32 -> vector<8x256xf32>
    %117 = arith.truncf %116 : vector<8x256xf32> to vector<8x256xbf16>
    %c0_52 = arith.constant 0 : index
    %c0_53 = arith.constant 0 : index
    %118 = vector.load %arg5[%c0_52, %c0_53] : memref<73x256xbf16, #tpu.memory_space<vmem>>, vector<8x256xbf16>
    tpu.vector_store %arg5[%c0_52, %c0_53], %117 {strides = array<i32>} : memref<73x256xbf16, #tpu.memory_space<vmem>>, vector<8x256xbf16>,
    %119 = arith.truncf %110 : vector<8x256xf32> to vector<8x256xbf16>
    %c24_54 = arith.constant 24 : index
    %c0_55 = arith.constant 0 : index
    %120 = vector.load %arg5[%c24_54, %c0_55] : memref<73x256xbf16, #tpu.memory_space<vmem>>, vector<8x256xbf16>
    tpu.vector_store %arg5[%c24_54, %c0_55], %119 {strides = array<i32>} : memref<73x256xbf16, #tpu.memory_space<vmem>>, vector<8x256xbf16>,
    %c240_i32_56 = arith.constant 240 : i32
    %121 = tpu.dynamic_rotate %110 by %c240_i32_56 dim 1 : vector<8x256xf32>, i32 -> vector<8x256xf32>
    %122 = arith.truncf %121 : vector<8x256xf32> to vector<8x256xbf16>
    %c48 = arith.constant 48 : index
    %c0_57 = arith.constant 0 : index
    %123 = vector.load %arg5[%c48, %c0_57] : memref<73x256xbf16, #tpu.memory_space<vmem>>, vector<8x256xbf16>
    tpu.vector_store %arg5[%c48, %c0_57], %122 {strides = array<i32>} : memref<73x256xbf16, #tpu.memory_space<vmem>>, vector<8x256xbf16>,
    %c16_i32_58 = arith.constant 16 : i32
    %124 = tpu.dynamic_rotate %105 by %c16_i32_58 dim 1 : vector<8x256xf32>, i32 -> vector<8x256xf32>
    %125 = arith.truncf %124 : vector<8x256xf32> to vector<8x256xbf16>
    %c8_59 = arith.constant 8 : index
    %c0_60 = arith.constant 0 : index
    %126 = vector.load %arg5[%c8_59, %c0_60] : memref<73x256xbf16, #tpu.memory_space<vmem>>, vector<8x256xbf16>
    tpu.vector_store %arg5[%c8_59, %c0_60], %125 {strides = array<i32>} : memref<73x256xbf16, #tpu.memory_space<vmem>>, vector<8x256xbf16>,
    %127 = arith.truncf %105 : vector<8x256xf32> to vector<8x256xbf16>
    %c32_61 = arith.constant 32 : index
    %c0_62 = arith.constant 0 : index
    %128 = vector.load %arg5[%c32_61, %c0_62] : memref<73x256xbf16, #tpu.memory_space<vmem>>, vector<8x256xbf16>
    tpu.vector_store %arg5[%c32_61, %c0_62], %127 {strides = array<i32>} : memref<73x256xbf16, #tpu.memory_space<vmem>>, vector<8x256xbf16>,
    %c240_i32_63 = arith.constant 240 : i32
    %129 = tpu.dynamic_rotate %105 by %c240_i32_63 dim 1 : vector<8x256xf32>, i32 -> vector<8x256xf32>
    %130 = arith.truncf %129 : vector<8x256xf32> to vector<8x256xbf16>
    %c56 = arith.constant 56 : index
    %c0_64 = arith.constant 0 : index
    %131 = vector.load %arg5[%c56, %c0_64] : memref<73x256xbf16, #tpu.memory_space<vmem>>, vector<8x256xbf16>
    tpu.vector_store %arg5[%c56, %c0_64], %130 {strides = array<i32>} : memref<73x256xbf16, #tpu.memory_space<vmem>>, vector<8x256xbf16>,
    %c16_i32_65 = arith.constant 16 : i32
    %132 = tpu.dynamic_rotate %115 by %c16_i32_65 dim 1 : vector<8x256xf32>, i32 -> vector<8x256xf32>
    %133 = arith.truncf %132 : vector<8x256xf32> to vector<8x256xbf16>
    %c16_66 = arith.constant 16 : index
    %c0_67 = arith.constant 0 : index
    %134 = vector.load %arg5[%c16_66, %c0_67] : memref<73x256xbf16, #tpu.memory_space<vmem>>, vector<8x256xbf16>
    tpu.vector_store %arg5[%c16_66, %c0_67], %133 {strides = array<i32>} : memref<73x256xbf16, #tpu.memory_space<vmem>>, vector<8x256xbf16>,
    %135 = arith.truncf %115 : vector<8x256xf32> to vector<8x256xbf16>
    %c40 = arith.constant 40 : index
    %c0_68 = arith.constant 0 : index
    %136 = vector.load %arg5[%c40, %c0_68] : memref<73x256xbf16, #tpu.memory_space<vmem>>, vector<8x256xbf16>
    tpu.vector_store %arg5[%c40, %c0_68], %135 {strides = array<i32>} : memref<73x256xbf16, #tpu.memory_space<vmem>>, vector<8x256xbf16>,
    %c240_i32_69 = arith.constant 240 : i32
    %137 = tpu.dynamic_rotate %115 by %c240_i32_69 dim 1 : vector<8x256xf32>, i32 -> vector<8x256xf32>
    %138 = arith.truncf %137 : vector<8x256xf32> to vector<8x256xbf16>
    %c64 = arith.constant 64 : index
    %c0_70 = arith.constant 0 : index
    %139 = vector.load %arg5[%c64, %c0_70] : memref<73x256xbf16, #tpu.memory_space<vmem>>, vector<8x256xbf16>
    tpu.vector_store %arg5[%c64, %c0_70], %138 {strides = array<i32>} : memref<73x256xbf16, #tpu.memory_space<vmem>>, vector<8x256xbf16>,
    %cst_71 = arith.constant 0.000000e+00 : bf16
    %140 = vector.broadcast %cst_71 : bf16 to vector<24x16xbf16>
    %c0_72 = arith.constant 0 : index
    %c0_73 = arith.constant 0 : index
    %141 = vector.load %arg5[%c0_72, %c0_73] : memref<73x256xbf16, #tpu.memory_space<vmem>>, vector<24x16xbf16>
    tpu.vector_store %arg5[%c0_72, %c0_73], %140 {strides = array<i32>} : memref<73x256xbf16, #tpu.memory_space<vmem>>, vector<24x16xbf16>,
    %cst_74 = arith.constant 0.000000e+00 : bf16
    %142 = vector.broadcast %cst_74 : bf16 to vector<24x16xbf16>
    %c48_75 = arith.constant 48 : index
    %c240_76 = arith.constant 240 : index
    %143 = vector.load %arg5[%c48_75, %c240_76] : memref<73x256xbf16, #tpu.memory_space<vmem>>, vector<24x16xbf16>
    tpu.vector_store %arg5[%c48_75, %c240_76], %142 {strides = array<i32>} : memref<73x256xbf16, #tpu.memory_space<vmem>>, vector<24x16xbf16>,
    %cst_77 = arith.constant 1.000000e+00 : bf16
    %144 = vector.broadcast %cst_77 : bf16 to vector<1x256xbf16>
    %c72 = arith.constant 72 : index
    %c0_78 = arith.constant 0 : index
    %145 = vector.load %arg5[%c72, %c0_78] : memref<73x256xbf16, #tpu.memory_space<vmem>>, vector<1x256xbf16>
    tpu.vector_store %arg5[%c72, %c0_78], %144 {strides = array<i32>} : memref<73x256xbf16, #tpu.memory_space<vmem>>, vector<1x256xbf16>,
    %c0_79 = arith.constant 0 : index
    %c0_80 = arith.constant 0 : index
    %146 = vector.load %arg5[%c0_79, %c0_80] : memref<73x256xbf16, #tpu.memory_space<vmem>>, vector<73x256xbf16>
    %c0_81 = arith.constant 0 : index
    %c0_82 = arith.constant 0 : index
    %147 = vector.load %arg3[%c0_81, %c0_82] : memref<8x73xbf16, #tpu.memory_space<vmem>>, vector<8x73xbf16>
    %cst_83 = arith.constant dense<0.000000e+00> : vector<8x256xf32>
    %148 = tpu.matmul %147, %146, %cst_83 {dimension_numbers = #tpu.dot_dimension_numbers<[1], [0], [0], [1], [0, 0, 1, 1], [], []>} : vector<8x73xbf16>, vector<73x256xbf16>, vector<8x256xf32> -> vector<8x256xf32>
    %149 = vector.extract_strided_slice %148 {offsets = [0, 0], sizes = [2, 256], strides = [1, 1]} : vector<8x256xf32> to vector<2x256xf32>
    %c0_84 = arith.constant 0 : index
    %c0_85 = arith.constant 0 : index
    %c0_86 = arith.constant 0 : index
    %150 = vector.load %arg4[%c0_84, %c0_85, %c0_86] : memref<1x8x256xf32, #tpu.memory_space<vmem>>, vector<1x2x256xf32>
    %151 = vector.shape_cast %150 : vector<1x2x256xf32> to vector<2x256xf32>
    %152 = vector.shape_cast %149 : vector<2x256xf32> to vector<1x2x256xf32>
    tpu.vector_store %arg4[%c0_84, %c0_85, %c0_86], %152 {strides = array<i32>} : memref<1x8x256xf32, #tpu.memory_space<vmem>>, vector<1x2x256xf32>,
    %153 = vector.extract_strided_slice %148 {offsets = [2, 0], sizes = [4, 256], strides = [1, 1]} : vector<8x256xf32> to vector<4x256xf32>
    %c0_87 = arith.constant 0 : index
    %c0_88 = arith.constant 0 : index
    %c0_89 = arith.constant 0 : index
    %154 = vector.load %arg1[%c0_87, %c0_88, %c0_89] : memref<1x4x256xf32, #tpu.memory_space<vmem>>, vector<1x4x256xf32>
    %155 = vector.shape_cast %154 : vector<1x4x256xf32> to vector<4x256xf32>
    %156 = arith.addf %153, %155 : vector<4x256xf32>
    %c0_90 = arith.constant 0 : index
    %c2 = arith.constant 2 : index
    %c0_91 = arith.constant 0 : index
    %157 = vector.load %arg4[%c0_90, %c2, %c0_91] : memref<1x8x256xf32, #tpu.memory_space<vmem>>, vector<1x4x256xf32>
    %158 = vector.shape_cast %157 : vector<1x4x256xf32> to vector<4x256xf32>
    %159 = vector.shape_cast %156 : vector<4x256xf32> to vector<1x4x256xf32>
    tpu.vector_store %arg4[%c0_90, %c2, %c0_91], %159 {strides = array<i32>} : memref<1x8x256xf32, #tpu.memory_space<vmem>>, vector<1x4x256xf32>,
    %160 = vector.extract_strided_slice %148 {offsets = [6, 0], sizes = [2, 256], strides = [1, 1]} : vector<8x256xf32> to vector<2x256xf32>
    %c0_92 = arith.constant 0 : index
    %c6 = arith.constant 6 : index
    %c0_93 = arith.constant 0 : index
    %161 = vector.load %arg4[%c0_92, %c6, %c0_93] : memref<1x8x256xf32, #tpu.memory_space<vmem>>, vector<1x2x256xf32>
    %162 = vector.shape_cast %161 : vector<1x2x256xf32> to vector<2x256xf32>
    %163 = vector.shape_cast %160 : vector<2x256xf32> to vector<1x2x256xf32>
    tpu.vector_store %arg4[%c0_92, %c6, %c0_93], %163 {strides = array<i32>} : memref<1x8x256xf32, #tpu.memory_space<vmem>>, vector<1x2x256xf32>,
    return
  }
  func.func @transform_0(%arg0: i32) -> (i32, i32, i32) {
    %c0_i32 = arith.constant 0 : i32
    %c0_i32_0 = arith.constant 0 : i32
    %c0_i32_1 = arith.constant 0 : i32
    return %arg0, %c0_i32, %c0_i32_0 : i32, i32, i32
  }
  func.func @transform_1(%arg0: i32) -> (i32, i32) {
    %c0_i32 = arith.constant 0 : i32
    %c0_i32_0 = arith.constant 0 : i32
    %c0_i32_1 = arith.constant 0 : i32
    return %c0_i32, %c0_i32_0 : i32, i32
  }
  func.func @transform_2(%arg0: i32) -> (i32, i32) {
    %c0_i32 = arith.constant 0 : i32
    %c0_i32_0 = arith.constant 0 : i32
    %c0_i32_1 = arith.constant 0 : i32
    return %c0_i32, %c0_i32_0 : i32, i32
  }
  func.func @transform_3(%arg0: i32) -> (i32, i32, i32) {
    %c0_i32 = arith.constant 0 : i32
    %c0_i32_0 = arith.constant 0 : i32
    %c0_i32_1 = arith.constant 0 : i32
    return %arg0, %c0_i32, %c0_i32_0 : i32, i32, i32
  }
}

</mosaic_0001>

<bundles_post_ra>
// kernel: tpu_custom_call.1
= control target key start
LH: loop header
LB: loop body
LE: loop exit
PB: predicated region body
PF: predicated region fallthrough
CT: control target
= control target key end

     0   :  { %8 = vsyncpa [#allocation4], 0  ;;  %s1753_s0 = inlined_call_operand.hbm [shape: f32[2,4,256], index: 0, kind: input, shape index: {}]   ;;  %s1754_s1 = inlined_call_operand.hbm [shape: bf16[8,37], index: 1, kind: input, shape index: {}]   ;;  %s1755_s2 = inlined_call_operand.hbm [shape: bf16[8,73], index: 2, kind: input, shape index: {}]   ;;  %s1756_s3 = inlined_call_operand.hbm [shape: f32[2,8,256], index: 3, kind: output, shape index: {}]  }
   0x1   :  { %10 = vsyncpa [#allocation4 + $0x1], 0 }
   0x2   :  { %11 = vsyncpa [#allocation7], 0 }
   0x3   :  { %12 = vsyncpa [#allocation5], 0 }
   0x4   :  { %14 = vsyncpa [#allocation5 + $0x1], 0  ;;  %s1388_s12 = smov 0   ;;  %s1390_s13 = smov 0  }
   0x5   :  { %s1392_s14 = smov 0   ;;  %s1394_s15 = smov 0  }
   0x6 LB: > { %s1409_s16 = sadd.s32 4294967295, %s1354_s15   ;;  %s948_s17 = sadd.s32 4294967294, %s1354_s15   ;;  %s1354_s15 = sphi %s1394_s15, %s1792_s15   ;;  %s1350_s14 = sphi %s1392_s14, %s1791_s14   ;;  %s1346_s13 = sphi %s1390_s13, %s1790_s13   ;;  %s1342_s12 = sphi %s1388_s12, %s1789_s12  }
   0x7   : > { %p40_p0 = scmp.ne.s32.totalorder %s1346_s13, %s1342_s12  ;;  %p1757_p1 = scmp.eq.s32.totalorder %s1409_s16, 0 }
   0x8   : > { %p112_p3 = scmp.eq.s32.totalorder %s948_s17, 1  ;;  %p949_p5 = scmp.ge.s32.totalorder %s1354_s15, 1 }
   0x9   : > { %p1418_p4 = por %p1757_p1, %p40_p0  ;;  %p119_p7 = scmp.lt.s32.totalorder %s1354_s15, 3 }
   0xa   : > { %p1423_p6 = por %p112_p3, %p40_p0  ;;  %s1356_s21 = smov [#allocation6]  }
   0xb   : > { %s1763_s18 = scalar_select %p1418_p4, 1, 0 }
   0xc   : > { %s1764_s19 = scalar_select %p1423_p6, 1, 0 }
   0xd   : > { %p1428_p8 = pnand %p949_p5, %p119_p7  ;;  %s132_s22 = sshll.u32 %s1356_s21, 4  ;;  %s133_s22 = int_to_ptr.vmem [resolvable:$true] %s132_s22 }
   0xe   : > { %s1357_s23 = smov [#allocation8]   ;;  %s1442_s26 = sadd.s32 1, %s1354_s15  }
   0xf   : > { %s1765_s20 = scalar_select %p1428_p8, 1, 0 }
  0x10   : > { %p1034_p10 = pneg %p1428_p8  ;;  %s143_s24 = sshll.u32 %s1357_s23, 4  ;;  %s144_s24 = int_to_ptr.vmem [resolvable:$true] %s143_s24 }
  0x11   : > { %s24_s27 = ssub.s32 %s1354_s15, %s1442_s26  ;;  %s1217_s28 = scalar_lea.vmem %s133_s22, 64 }
  0x12   : > { %p1437_p11 = pnand %p1034_p10, %p1757_p1  ;;  %p1218_p13 = scmp.ne.s32.totalorder %s133_s22, %s1217_s28 }
  0x13   : > { %p1225_p5 = scmp.lt.s32.totalorder %s133_s22, %s133_s22  ;;  %p1226_p7 = scmp.lt.s32.totalorder %s1217_s28, %s1217_s28 }
  0x14   : > { %p1208_p12 = pneg %p1437_p11 }
  0x15   : > { %p1227_p10 = por %p1226_p7, %p1225_p5 }
  0x16   : > { %p1220_p0 = pnand %p1218_p13, %p1208_p12 }
  0x18   : > { %p1221_p3 = pneg %p1220_p0 }
  0x1a   : > { %p1228_p9 = pnand %p1227_p10, %p1221_p3 }
  0x1c   : > { %1231 = shalt.err (!%p1228_p9)
}
  0x1d   : > { %1037 = dma.hbm_to_vmem [thread:$0]  (!%p1437_p11), %s1754_s1, 64, %s133_s22, [#allocation7]  }
  0x1e   : > { %s1243_s4 = scalar_lea.vmem %s144_s24, 64  ;;  %p1251_p13 = scmp.lt.s32.totalorder %s144_s24, %s144_s24 }
  0x1f   : > { %p1244_p1 = scmp.ne.s32.totalorder %s144_s24, %s1243_s4  ;;  %p1252_p0 = scmp.lt.s32.totalorder %s1243_s4, %s1243_s4 }
  0x21   : > { %p1246_p2 = pnand %p1244_p1, %p1208_p12  ;;  %p1253_p4 = por %p1252_p0, %p1251_p13 }
  0x23   : > { %p1247_p6 = pneg %p1246_p2 }
  0x25   : > { %p1254_p8 = pnand %p1253_p4, %p1247_p6 }
  0x27   : > { %1257 = shalt.err (!%p1254_p8)
}
  0x28   : > { %1040 = dma.hbm_to_vmem [thread:$0]  (!%p1437_p11), %s1755_s2, 64, %s144_s24, [#allocation7]  }
  0x29   : > { %p25_p1 = scmp.eq.s32.totalorder %s24_s27, 0  ;;  %s27_s7 = sadd.s32 1, %s1350_s14 }
  0x2a   : > { %p34_p2 = scmp.ne.s32.totalorder %s1350_s14, %s1346_s13  ;;  %p35_p4 = scmp.eq.s32.totalorder %s1354_s15, 0 }
  0x2b   : > { %s1469_s8 = scalar_select %p25_p1, %s1350_s14, %s27_s7  }
  0x2c   : > { %p36_p6 = por %p35_p4, %p34_p2  ;;  %p1767_p8 = scmp.eq.s32.totalorder %s1409_s16, 1 }
  0x2d   : > { %p1051_p12 = scmp.lt.s32.totalorder %s1354_s15, 2  ;;  %s154_s10 = sand.u32 1, %s1350_s14  }
  0x2e   : > { %p1473_p9 = por %p1767_p8, %p34_p2  ;;  %s953_s11 = sshll.u32 %s154_s10, 3 }
  0x2f   : > { %s1002_s17 = sshll.u32 %s1354_s15, 7  ;;  %s158_s24 = scalar_lea.vmem [#allocation3], %s953_s11 }
  0x30   : > { %s1768_s9 = scalar_select %p1473_p9, 1, 0 }
  0x31   : > { %s1483_s23 = scalar_lea.hbm %s1753_s0, %s1002_s17  ;;  %s166_s25 = sshll.u32 %s158_s24, 4  ;;  %s167_s25 = int_to_ptr.vmem [resolvable:$true] %s166_s25 }
  0x32   : > { %p1485_p11 = pnand %p1051_p12, %p36_p6  ;;  %s155_s28 = scalar_lea.sflag [#allocation4], %s154_s10 }
  0x33   : > { %s1258_s29 = scalar_lea.hbm %s1483_s23, 128  ;;  %s1263_s5 = scalar_lea.hbm %s1753_s0, 256 }
  0x34   : > { %p1259_p3 = scmp.ne.s32.totalorder %s1483_s23, %s1258_s29  ;;  %p1260_p5 = pneg %p1485_p11 }
  0x35   : > { %p1264_p13 = scmp.lt.s32.totalorder %s1483_s23, %s1753_s0  ;;  %p1265_p0 = scmp.lt.s32.totalorder %s1263_s5, %s1258_s29 }
  0x36   : > { %p1261_p7 = pnand %p1260_p5, %p1259_p3 }
  0x37   : > { %p1266_p1 = por %p1265_p0, %p1264_p13 }
  0x38   : > { %p1262_p10 = pneg %p1261_p7 }
  0x3a   : > { %p1267_p2 = pnand %p1266_p1, %p1262_p10 }
  0x3c   : > { %1270 = shalt.err (!%p1267_p2)
}
  0x3d   : > { %s1271_s11 = scalar_lea.vmem %s167_s25, 128  ;;  %s1358_s10 = smov [#allocation3]  }
  0x3e   : > { %p1272_p4 = scmp.ne.s32.totalorder %s167_s25, %s1271_s11  ;;  %s1276_s17 = sshll.u32 %s1358_s10, 4  ;;  %s1277_s17 = int_to_ptr.vmem [resolvable:$false] %s1276_s17 }
  0x3f   : > { %s1278_s21 = scalar_lea.vmem %s1277_s17, 256  ;;  %p1279_p12 = scmp.lt.s32.totalorder %s167_s25, %s1277_s17 }
  0x40   : > { %p1274_p6 = pnand %p1272_p4, %p1260_p5  ;;  %p1280_p3 = scmp.lt.s32.totalorder %s1278_s21, %s1271_s11 }
  0x42   : > { %p1275_p8 = pneg %p1274_p6  ;;  %p1281_p7 = por %p1280_p3, %p1279_p12 }
  0x44   : > { %p1282_p9 = pnand %p1281_p7, %p1275_p8 }
  0x46   : > { %1285 = shalt.err (!%p1282_p9)
}
  0x47   : > { %1044 = dma.hbm_to_vmem [thread:$0]  (!%p1485_p11), %s1483_s23, 128, %s167_s25, %s155_s28  }
  0x48   : > { %p1770_p10 = scmp.ne.s32.totalorder %s1765_s20, 0 }
  0x49   : > { %s1506_s22 = sand.u32 (!%p1770_p10), 1, %s1346_s13   ;;  %p1771_p5 = scmp.ne.s32.totalorder (!%p1770_p10), %s1763_s18, 0 }
  0x4a   : > { %175 = sbr.rel (%p1770_p10) target bundleno = 1373 (0x55d), region = 32  ;;  %s957_s24 = sshll.u32 (!%p1770_p10), %s1506_s22, 3 }
  0x4b   : > { %s178_s29 = scalar_lea.sflag (!%p1770_p10), [#allocation4], %s1506_s22  ;;  %s181_s30 = scalar_lea.vmem (!%p1770_p10), [#allocation3], %s957_s24 }
  0x4f   : > { %1329 = dma.done.wait (%p1771_p5), %s178_s29, 128  }
  0x50   : > { %1331 = vsyncadd (%p1771_p5), %s178_s29, 4294967168  ;;  %p1772_p9 = scmp.eq.s32.totalorder %s1409_s16, 0 }
  0x52   : > { %1333 = dma.done.wait (%p1772_p9), [#allocation7], 128   ;;  %p1773_p11 = pmov %p1772_p9 }
  0x53   : > { %vm1762_vm0 = vcmask 1043456   ;;  %v1518_v0 = vld [vmem:[%s181_s30] sm:$0xff]  ;;  %v214_v16 = vlaneseq  ;;  %v1359_v17 = vmov 839922192   ;;  %s1360_s18 = smov 127   ;;  %s1361_s20 = smov 1  }
  0x54   : > { %1335 = vsyncadd (%p1773_p11), [#allocation7], 4294967168  ;;  %v1522_v1 = vcombine.high %v1518_v0, %v1518_v0  ;;  %v250_v2 = vsel %vm1762_vm0, %v1518_v0, 0.0  ;;  %v255_v3 = vmul.f32 %v1518_v0, %v1518_v0  ;;  %v270_v18 = vunpack.c.l.s4 %v1359_v17  ;;  %s1363_s23 = smov 112   ;;  %s1364_s25 = smov 16  }
  0x55   : > { %v273_v21 = vshrl.u32 %v214_v16, 7  ;;  %v1362_v32 = vmov 0   ;;  %v1539_v33 = vand.u32 127, %v214_v16  ;;  %vm451_vm1 = vcmask 1042434   ;;  %v458_v37 = vld [vmem:[#allocation2 + $0x20] sm:$0x44] }
  0x56   : > { %v251_v4 = vsel %vm1762_vm0, %v1522_v1, 0.0  ;;  %v257_v5 = vcombine.high %v255_v3, %v255_v3  ;;  %v259_v6 = vsel %vm1762_vm0, %v255_v3, 0.0  ;;  %v271_v20 = vunpack.c.0.s8 %v270_v18  ;;  %538 = vmatprep.mubr.bf16.mxu0 %v1362_v32  ;;  %820 = vmatprep.mubr.bf16.mxu1 %v1362_v32  ;;  %s960_s27 = sshll.u32 %s1506_s22, 4  ;;  %s1021_s28 = sshll.u32 %s1409_s16, 8 }
  0x57   : > { %v252_v7 = vadd.f32 %v251_v4, %v250_v2  ;;  %v216_v34 = vadd.s32 128, %v1539_v33  ;;  %v221_v35 = vand.u32 15, %v1539_v33  ;;  %vm452_vm2 = vsmask.f32 2304  ;;  %s211_s4 = scalar_lea.vmem [#allocation9], %s960_s27  ;;  %s1710_s11 = scalar_lea.hbm %s1756_s3, %s1021_s28 }
  0x58   : > { %v260_v8 = vsel %vm1762_vm0, %v257_v5, 0.0  ;;  %v274_v22 = vsub.s32 %v271_v20, %v273_v21  ;;  %vm454_vm3 = vcmask 1046534   ;;  %vm455_vm4 = vsmask.f32 6400  ;;  %vm453_vm5 = vmand %vm451_vm1, %vm452_vm2  ;;  %s859_s5 = sshll.u32 %s211_s4, 4  ;;  %s845_s16 = scalar_lea.sflag [#allocation5], %s1506_s22  ;;  %s1712_s5 = int_to_ptr.vmem [resolvable:$true] %s859_s5 }
  0x59   : > { %253 = vadd.xlane.f32.xlu0 %v252_v7  ;;  %v261_v9 = vadd.f32 %v260_v8, %v259_v6  ;;  %v228_v36 = vand.u32 15, %v216_v34  ;;  %vm456_vm6 = vmand %vm454_vm3, %vm455_vm4  ;;  %vm311_vm7 = vcmp.lt.s32.totalorder %v1539_v33, 127  ;;  %vm1544_vm8 = vcmp.lt.s32.totalorder %v221_v35, 15  ;;  %s1286_s10 = scalar_lea.vmem %s1712_s5, 256  ;;  %p1786_p0 = scmp.ne.s32.totalorder %s1768_s9, 0 }
  0x5a   : > { %vm457_vm9 = vmor %vm456_vm6, %vm453_vm5  ;;  %vm298_vm11 = vcmp.lt.s32.totalorder %v1539_v33, 1  ;;  %vm1561_vm12 = vcmp.gt.s32.totalorder %v221_v35, 0  ;;  %vm350_vm14 = vcmp.lt.s32.totalorder %v1539_v33, 112  ;;  %vm324_vm15 = vcmp.lt.s32.totalorder %v1539_v33, 16  ;;  %p1287_p13 = scmp.ne.s32.totalorder %s1712_s5, %s1286_s10  ;;  %s1367_s17 = smov [#allocation9]  }
  0x5b   : > { %vm1548_vm10 = vcmp.lt.s32.totalorder %v228_v36, 15  ;;  %v459_v43 = vsel %vm457_vm9, 1065369472, %v458_v37  ;;  %vm1565_vm13 = vcmp.gt.s32.totalorder %v228_v36, 0  ;;  %vm449_vm1 = vcmask 1042304   ;;  %s1290_s21 = sshll.u32 %s1367_s17, 4  ;;  %s1291_s21 = int_to_ptr.vmem [resolvable:$false] %s1290_s21 }
  0x5c   : > { %460 = vst [vmem:[#allocation2 + $0x20] sm:$0x44] %v459_v43  ;;  %vm447_vm2 = vcmask 1044352   ;;  %vm496_vm3 = vcmask 1041408   ;;  %vm497_vm4 = vcmask 1042432   ;;  %v1365_v34 = vmov 65535   ;;  %p1288_p1 = pnand %p1287_p13, %p1786_p0  ;;  %p1293_p4 = scmp.lt.s32.totalorder %s1712_s5, %s1291_s21 }
  0x5d   : > { %262 = vadd.xlane.f32.xlu0 %v261_v9  ;;  %v498_v35 = vsel %vm496_vm3, 4294967295, %v1365_v34  ;;  %vm1761_vm5 = vcmask 125952   ;;  %vm445_vm6 = vcmask 123904   ;;  %vm492_vm9 = vcmask 302080   ;;  %s1292_s24 = scalar_lea.vmem %s1291_s21, 512 }
  0x5e   : > { %v499_v43 = vsel %vm497_vm4, %v498_v35, 0  ;;  %vm707_vm3 = vsmask.f32 256  ;;  %vm709_vm4 = vcmask 1044484   ;;  %v834_v39 = vrot.slane %v1518_v0, 6  ;;  %p1289_p2 = pneg %p1288_p1  ;;  %p1294_p6 = scmp.lt.s32.totalorder %s1292_s24, %s1286_s10 }
  0x60   : > { %p1295_p8 = por %p1294_p6, %p1293_p4 }
  0x62   : > { %p1296_p12 = pnand %p1295_p8, %p1289_p2 }
  0xe2   : > { %v254_v10 = vpop.xlane.xlu0 %253 }
  0xe3   : > { %v264_v11 = vmul.f32 0.00390625, %v254_v10 }
  0xe5   : > { %v266_v13 = vmul.f32 %v264_v11, %v264_v11  ;;  %v275_v23 = vrot.slane %v264_v11, %v274_v22 }
  0xe6   : > { %v263_v12 = vpop.xlane.xlu0 %262 }
  0xe7   : > { %v265_v14 = vmul.f32 0.00390625, %v263_v12  ;;  %v277_v25 = vsub.f32 %v1518_v0, %v275_v23 }
  0xe9   : > { %v267_v15 = vsub.f32 %v265_v14, %v266_v13 }
  0xeb   : > { %v278_v19 = vadd.f32 1e-05, %v267_v15 }
  0xed   : > { %1194 = vrsqrt.f32 %v278_v19 }
  0xfa   : > { %v1195_v24 = vpop.eup %1194 }
  0xfb   : > { %v287_v26 = vrot.slane %v1195_v24, %v274_v22 }
  0xfd   : > { %v289_v27 = vmul.f32 %v287_v26, %v277_v25 }
  0xff   : > { %v290_v28 = vmax.f32 %v289_v27, 0.0 }
 0x101   : > { %v292_v29 = vcombine.high %v290_v28, %v290_v28 }
 0x103   : > { %v1096_v30 = vpack.i.bf16 %v292_v29, %v290_v28  ;;  %v1007_v31 = vpack.c.bf16 %v292_v29, %v290_v28 }
 0x105   : > { %1097 = vrot.lane.b32.xlu1 %v1096_v30, %s1360_s18  ;;  %386 = vst [vmem:[#allocation2 + $0x10] sm:$0x33] %v1007_v31 }
 0x109   : > { %1102 = vrot.lane.b32.xlu1 %v1096_v30, %s1361_s20 }
 0x10d   : > { %1112 = vrot.lane.b32.xlu1 %v1096_v30, %s1363_s23 }
 0x111   : > { %1117 = vrot.lane.b32.xlu1 %v1096_v30, %s1364_s25 }
 0x177   : > { %v1098_v38 = vpop.permute.xlu1 %1097 }
 0x178   : > { %v1100_v40 = vunpack.i.h.bf16 %v1098_v38  ;;  %v1099_v41 = vunpack.i.l.bf16 %v1098_v38 }
 0x17a   : > { %v312_v44 = vsel %vm311_vm7, %v1099_v41, %v1100_v40  ;;  %v313_v45 = vsel %vm311_vm7, %v1100_v40, %v1099_v41 }
 0x17b   : > { %v1103_v46 = vpop.permute.xlu1 %1102  ;;  %v318_v47 = vsel %vm1544_vm8, %v312_v44, 0.0  ;;  %v319_v48 = vsel %vm1548_vm10, %v313_v45, 0.0 }
 0x17c   : > { %v1105_v51 = vunpack.i.h.bf16 %v1103_v46  ;;  %v1104_v52 = vunpack.i.l.bf16 %v1103_v46  ;;  %v1106_v53 = vpack.i.bf16 %v319_v48, %v318_v47  ;;  %v1010_v54 = vpack.c.bf16 %v319_v48, %v318_v47 }
 0x17e   : > { %v299_v55 = vsel %vm298_vm11, %v1104_v52, %v1105_v51  ;;  %v300_v56 = vsel %vm298_vm11, %v1105_v51, %v1104_v52  ;;  %1107 = vrot.lane.b32.xlu0 %v1106_v53, %s1363_s23  ;;  %v425_v57 = vrot.slane %v1010_v54, 6 }
 0x17f   : > { %v1113_v58 = vpop.permute.xlu1 %1112  ;;  %v305_v59 = vsel %vm1561_vm12, %v300_v56, 0.0  ;;  %v306_v60 = vsel %vm1565_vm13, %v299_v55, 0.0 }
 0x180   : > { %427 = vst [vmem:[#allocation2 + $0x10] sm:$0xcc] %v425_v57  ;;  %v1115_v61 = vunpack.i.h.bf16 %v1113_v58  ;;  %v1114_v62 = vunpack.i.l.bf16 %v1113_v58  ;;  %v1121_v63 = vpack.i.bf16 %v306_v60, %v305_v59  ;;  %v1004_v2 = vpack.c.bf16 %v306_v60, %v305_v59  ;;  %v466_v57 = vld [vmem:[#allocation6] sm:$0xf] }
 0x182   : > { %v391_v3 = vsel %vm350_vm14, %v1114_v62, %v1115_v61  ;;  %v392_v4 = vsel %vm350_vm14, %v1115_v61, %v1114_v62  ;;  %1122 = vrot.lane.b32.xlu1 %v1121_v63, %s1363_s23  ;;  %v343_v5 = vrot.slane %v1004_v2, 6 }
 0x183   : > { %v1008_v6 = vpack.c.bf16 %v392_v4, %v391_v3  ;;  %v1118_v7 = vpop.permute.xlu1 %1117 }
 0x184   : > { %345 = vst [vmem:[#allocation2 + $0x8] sm:$0xcc] %v343_v5  ;;  %v1120_v8 = vunpack.i.h.bf16 %v1118_v7  ;;  %v1119_v9 = vunpack.i.l.bf16 %v1118_v7 }
 0x185   : > { %v400_v10 = vrot.slane %v1008_v6, 6 }
 0x186   : > { %v366_v11 = vsel %vm324_vm15, %v1119_v9, %v1120_v8  ;;  %v367_v12 = vsel %vm324_vm15, %v1120_v8, %v1119_v9  ;;  %1127 = vrot.lane.b32.xlu1 %v1121_v63, %s1364_s25 }
 0x187   : > { %402 = vst [vmem:[#allocation2 + $0x18] sm:$0xcc] %v400_v10  ;;  %v1006_v13 = vpack.c.bf16 %v366_v11, %v367_v12 }
 0x189   : > { %v375_v14 = vrot.slane %v1006_v13, 6 }
 0x18a   : > { %1132 = vrot.lane.b32.xlu1 %v1106_v53, %s1364_s25 }
 0x18b   : > { %377 = vst [vmem:[#allocation2] sm:$0xcc] %v375_v14 }
 0x1f0   : > { %v1108_v15 = vpop.permute.xlu0 %1107 }
 0x1f1   : > { %v1110_v16 = vunpack.i.h.bf16 %v1108_v15  ;;  %v1109_v17 = vunpack.i.l.bf16 %v1108_v15 }
 0x1f3   : > { %v432_v18 = vsel %vm350_vm14, %v1109_v17, %v1110_v16  ;;  %v433_v19 = vsel %vm350_vm14, %v1110_v16, %v1109_v17 }
 0x1f4   : > { %v1011_v20 = vpack.c.bf16 %v433_v19, %v432_v18  ;;  %v1123_v21 = vpop.permute.xlu1 %1122 }
 0x1f5   : > { %v1125_v22 = vunpack.i.h.bf16 %v1123_v21  ;;  %v1124_v23 = vunpack.i.l.bf16 %v1123_v21 }
 0x1f6   : > { %442 = vst [vmem:[#allocation2 + $0x20] sm:$0x33] %v1011_v20  ;;  %v713_v20 = vld [vmem:[#allocation2 + $0x48] sm:$0x11] }
 0x1f7   : > { %450 = vst.msk [vmem:[#allocation2 + $0x24] sm:$0x3] %vm449_vm1, %v1362_v32  ;;  %v351_v24 = vsel %vm350_vm14, %v1124_v23, %v1125_v22  ;;  %v352_v25 = vsel %vm350_vm14, %v1125_v22, %v1124_v23  ;;  %vm706_vm1 = vcmask 1040384  }
 0x1f8   : > { %v1005_v26 = vpack.c.bf16 %v352_v25, %v351_v24  ;;  %v1128_v27 = vpop.permute.xlu1 %1127 }
 0x1f9   : > { %v1130_v28 = vunpack.i.h.bf16 %v1128_v27  ;;  %v1129_v29 = vunpack.i.l.bf16 %v1128_v27 }
 0x1fa   : > { %361 = vst [vmem:[#allocation2 + $0x18] sm:$0x33] %v1005_v26 }
 0x1fb   : > { %448 = vst.msk [vmem:[#allocation2 + $0x1c] sm:$0xf] %vm447_vm2, %v1362_v32  ;;  %v325_v30 = vsel %vm324_vm15, %v1129_v29, %v1130_v28  ;;  %v326_v31 = vsel %vm324_vm15, %v1130_v28, %v1129_v29 }
 0x1fc   : > { %v1003_v36 = vpack.c.bf16 %v325_v30, %v326_v31  ;;  %v1133_v37 = vpop.permute.xlu1 %1132 }
 0x1fd   : > { %v1135_v38 = vunpack.i.h.bf16 %v1133_v37  ;;  %v1134_v40 = vunpack.i.l.bf16 %v1133_v37 }
 0x1fe   : > { %335 = vst [vmem:[#allocation2] sm:$0x33] %v1003_v36  ;;  %v465_v41 = vld [vmem:[#allocation2 + $0x20] sm:$0x77] }
 0x1ff   : > { %444 = vst.msk [vmem:[#allocation2] sm:$0xf] %vm1761_vm5, %v1362_v32  ;;  %v407_v44 = vsel %vm324_vm15, %v1134_v40, %v1135_v38  ;;  %v408_v45 = vsel %vm324_vm15, %v1135_v38, %v1134_v40  ;;  %v975_v46 = vcombine.high %v465_v41, %v465_v41  ;;  %v974_v47 = vcombine.low %v465_v41, %v465_v41 }
 0x200   : > { %v1009_v48 = vpack.c.bf16 %v407_v44, %v408_v45 }
 0x201   : > { %v504_v51 = vand.u32 %v975_v46, %v499_v43  ;;  %v501_v52 = vand.u32 %v974_v47, %v499_v43  ;;  %v1181_v54 = vld [vmem:[#allocation2 + $0x10] ss:$8 sps:$4 sm:$0xff]  }
 0x202   : > { %417 = vst [vmem:[#allocation2 + $0x8] sm:$0x33] %v1009_v48  ;;  %v1179_v53 = vld [vmem:[#allocation2 + $0x14] ss:$8 sps:$4 sm:$0xff]  }
 0x203   : > { %446 = vst.msk [vmem:[#allocation2 + $0x8] sm:$0x3] %vm445_vm6, %v1362_v32  ;;  %516 = vmatprep.subr.bf16.mxu0 %v504_v51  ;;  %vm710_vm6 = vsmask.f32 4352 }
 0x204   : > { %517 = vmatpush1.bf16.msra.mxu0 %v501_v52  ;;  %vm711_vm5 = vmand %vm709_vm4, %vm710_vm6 }
 0x205   : > { %518 = vmatprep.subr.bf16.mxu0 %v1179_v53 }
 0x208   : > { %519 = vmatpush1.bf16.msra.mxu0 %v1181_v54 }
 0x209   : > { %v1182_v55 = vld [vmem:[#allocation2 + $0x4] ss:$8 sps:$4 sm:$0xff]  }
 0x20a   : > { %v1184_v56 = vld [vmem:[#allocation2] ss:$8 sps:$4 sm:$0xff]   ;;  %520 = vmatprep.subr.bf16.mxu0 %v1182_v55 }
 0x20c   : > { %521 = vmatpush1.bf16.msra.mxu0 %v1184_v56 }
 0x20f   : > { %976 = vmatmul.mubr.msk.bf16.vlgmr.msra.gmra.mxu0 %vm492_vm9, %v466_v57  ;;  %vm708_vm9 = vmand %vm706_vm1, %vm707_vm3 }
 0x210   : > { %vm712_vm0 = vmor %vm711_vm5, %vm708_vm9 }
 0x211   : > { %v714_v27 = vsel %vm712_vm0, 1065369472, %v713_v20  ;;  %vm779_vm0 = vcmask 1044480  }
 0x212   : > { %715 = vst [vmem:[#allocation2 + $0x48] sm:$0x11] %v714_v27 }
 0x2cf   : > { %v540_v58 = vpop.f32.mrf.mxu0 }
 0x2d0   : > { %v550_v61 = vmul.f32 %v540_v58, %v540_v58 }
 0x2d1   : > { %v542_v59 = vpop.f32.mrf.mxu0 }
 0x2d2   : > { %v547_v60 = vadd.f32 %v542_v59, %v540_v58  ;;  %v551_v62 = vmul.f32 %v542_v59, %v542_v59 }
 0x2d3   : > { %v544_v63 = vpop.f32.mrf.mxu0 }
 0x2d4   : > { %548 = vadd.xlane.f32.xlu1 %v547_v60  ;;  %v552_v2 = vadd.f32 %v551_v62, %v550_v61 }
 0x2d5   : > { %v545_v3 = vpop.f32.mrf.mxu0 }
 0x2d6   : > { %553 = vadd.xlane.f32.xlu0 %v552_v2 }
 0x35d   : > { %v549_v4 = vpop.xlane.xlu1 %548 }
 0x35e   : > { %v555_v5 = vmul.f32 0.00390625, %v549_v4 }
 0x35f   : > { %v554_v6 = vpop.xlane.xlu0 %553 }
 0x360   : > { %v556_v7 = vmul.f32 0.00390625, %v554_v6  ;;  %v557_v8 = vmul.f32 %v555_v5, %v555_v5  ;;  %v559_v11 = vsub.f32 %v540_v58, %v555_v5  ;;  %v560_v12 = vsub.f32 %v542_v59, %v555_v5 }
 0x362   : > { %v558_v9 = vsub.f32 %v556_v7, %v557_v8 }
 0x364   : > { %v561_v10 = vadd.f32 1e-05, %v558_v9 }
 0x366   : > { %1196 = vrsqrt.f32 %v561_v10 }
 0x373   : > { %v1197_v13 = vpop.eup %1196 }
 0x374   : > { %v563_v14 = vmul.f32 %v1197_v13, %v559_v11  ;;  %v564_v15 = vmul.f32 %v1197_v13, %v560_v12 }
 0x376   : > { %v1614_v16 = vmax.f32 %v563_v14, 0.0  ;;  %v1616_v17 = vmax.f32 %v564_v15, 0.0 }
 0x378   : > { %v1141_v18 = vpack.i.bf16 %v1616_v17, %v1614_v16  ;;  %v1016_v19 = vpack.c.bf16 %v1616_v17, %v1614_v16 }
 0x37a   : > { %1142 = vrot.lane.b32.xlu1 %v1141_v18, %s1361_s20  ;;  %645 = vst [vmem:[#allocation2 + $0x20] sm:$0xff] %v1016_v19  ;;  %1137 = vrot.lane.b32.xlu0 %v1141_v18, %s1360_s18 }
 0x3ec   : > { %v1143_v21 = vpop.permute.xlu1 %1142  ;;  %v1138_v22 = vpop.permute.xlu0 %1137 }
 0x3ed   : > { %v1145_v23 = vunpack.i.h.bf16 %v1143_v21  ;;  %v1144_v24 = vunpack.i.l.bf16 %v1143_v21  ;;  %v1140_v25 = vunpack.i.h.bf16 %v1138_v22  ;;  %v1139_v26 = vunpack.i.l.bf16 %v1138_v22 }
 0x3ef   : > { %v571_v28 = vsel %vm298_vm11, %v1144_v24, %v1145_v23  ;;  %v572_v29 = vsel %vm298_vm11, %v1145_v23, %v1144_v24  ;;  %v1630_v30 = vsel %vm311_vm7, %v1139_v26, %v1140_v25  ;;  %v1634_v31 = vsel %vm311_vm7, %v1140_v25, %v1139_v26 }
 0x3f0   : > { %v573_v35 = vsel %vm1561_vm12, %v572_v29, 0.0  ;;  %v574_v36 = vsel %vm1565_vm13, %v571_v28, 0.0  ;;  %v581_v37 = vsel %vm1544_vm8, %v1630_v30, 0.0  ;;  %v582_v38 = vsel %vm1548_vm10, %v1634_v31, 0.0 }
 0x3f1   : > { %v1151_v40 = vpack.i.bf16 %v574_v36, %v573_v35  ;;  %v1646_v41 = vpack.c.bf16 %v574_v36, %v573_v35  ;;  %v1146_v43 = vpack.i.bf16 %v582_v38, %v581_v37  ;;  %vm1782_vm7 = vcmask 1043456  }
 0x3f2   : > { %v780_v12 = vsel %vm1782_vm7, 4294967295, %v1365_v34  ;;  %vm1783_vm11 = vcmask 125952   ;;  %v1200_v27 = vpack.c.bf16 %v1634_v31, %v1616_v17  ;;  %v1204_v28 = vpack.c.bf16 %v1630_v30, %v1614_v16  ;;  %v726_v17 = vld [vmem:[#allocation8] sm:$0xf] }
 0x3f3   : > { %606 = vst [vmem:[#allocation2 + $0x18] sm:$0xff] %v1646_v41  ;;  %1152 = vrot.lane.b32.xlu0 %v1151_v40, %s1363_s23  ;;  %1147 = vrot.lane.b32.xlu1 %v1146_v43, %s1363_s23  ;;  %v781_v20 = vsel %vm779_vm0, %v780_v12, 0  ;;  %vm1784_vm12 = vmmov %vm1783_vm11  ;;  %v835_v31 = vrot.slane %v1522_v1, 6 }
 0x3f4   : > { %vm1785_vm13 = vmmov %vm1783_vm11 }
 0x3f7   : > { %1162 = vrot.lane.b32.xlu0 %v1146_v43, %s1364_s25  ;;  %1157 = vrot.lane.b32.xlu1 %v1141_v18, %s1363_s23 }
 0x3fb   : > { %1172 = vrot.lane.b32.xlu0 %v1141_v18, %s1364_s25  ;;  %1167 = vrot.lane.b32.xlu1 %v1151_v40, %s1364_s25 }
 0x465   : > { %v1153_v49 = vpop.permute.xlu0 %1152  ;;  %v1148_v50 = vpop.permute.xlu1 %1147 }
 0x466   : > { %v1155_v44 = vunpack.i.h.bf16 %v1153_v49  ;;  %v1154_v45 = vunpack.i.l.bf16 %v1153_v49  ;;  %v1150_v46 = vunpack.i.h.bf16 %v1148_v50  ;;  %v1149_v47 = vunpack.i.l.bf16 %v1148_v50 }
 0x468   : > { %v611_v48 = vsel %vm350_vm14, %v1154_v45, %v1155_v44  ;;  %v612_v51 = vsel %vm350_vm14, %v1155_v44, %v1154_v45  ;;  %v689_v52 = vsel %vm350_vm14, %v1149_v47, %v1150_v46  ;;  %v690_v53 = vsel %vm350_vm14, %v1150_v46, %v1149_v47 }
 0x469   : > { %v1014_v54 = vpack.c.bf16 %v612_v51, %v611_v48  ;;  %v1020_v55 = vpack.c.bf16 %v690_v53, %v689_v52  ;;  %v1163_v56 = vpop.permute.xlu0 %1162  ;;  %v1158_v57 = vpop.permute.xlu1 %1157 }
 0x46a   : > { %v1165_v58 = vunpack.i.h.bf16 %v1163_v56  ;;  %v1164_v59 = vunpack.i.l.bf16 %v1163_v56  ;;  %v1160_v60 = vunpack.i.h.bf16 %v1158_v57  ;;  %v1159_v61 = vunpack.i.l.bf16 %v1158_v57 }
 0x46b   : > { %621 = vst [vmem:[#allocation2 + $0x30] sm:$0xff] %v1014_v54  ;;  %699 = vst [vmem:[#allocation2 + $0x40] sm:$0xff] %v1020_v55 }
 0x46c   : > { %703 = vst.msk [vmem:[#allocation2 + $0x34] sm:$0xf] %vm447_vm2, %v1362_v32  ;;  %705 = vst.msk [vmem:[#allocation2 + $0x44] sm:$0xf] %vm447_vm2, %v1362_v32  ;;  %v665_v62 = vsel %vm324_vm15, %v1164_v59, %v1165_v58  ;;  %v666_v63 = vsel %vm324_vm15, %v1165_v58, %v1164_v59  ;;  %v650_v2 = vsel %vm350_vm14, %v1159_v61, %v1160_v60 }
 0x46d   : > { %v651_v3 = vsel %vm350_vm14, %v1160_v60, %v1159_v61  ;;  %v1018_v4 = vpack.c.bf16 %v665_v62, %v666_v63  ;;  %v1173_v6 = vpop.permute.xlu0 %1172  ;;  %v1168_v7 = vpop.permute.xlu1 %1167  ;;  %vm1366_vm14 = vmmov 1  }
 0x46e   : > { %v1017_v5 = vpack.c.bf16 %v651_v3, %v650_v2  ;;  %v1175_v8 = vunpack.i.h.bf16 %v1173_v6  ;;  %v1174_v9 = vunpack.i.l.bf16 %v1173_v6  ;;  %v1170_v10 = vunpack.i.h.bf16 %v1168_v7 }
 0x46f   : > { %v1169_v11 = vunpack.i.l.bf16 %v1168_v7  ;;  %675 = vst [vmem:[#allocation2 + $0x10] sm:$0xff] %v1018_v4 }
 0x470   : > { %660 = vst [vmem:[#allocation2 + $0x38] sm:$0xff] %v1017_v5  ;;  %702 = vst.msk [vmem:[#allocation2 + $0x10] sm:$0xf] %vm1783_vm11, %v1362_v32  ;;  %v626_v13 = vsel %vm324_vm15, %v1174_v9, %v1175_v8  ;;  %v627_v14 = vsel %vm324_vm15, %v1175_v8, %v1174_v9 }
 0x471   : > { %704 = vst.msk [vmem:[#allocation2 + $0x3c] sm:$0xf] %vm447_vm2, %v1362_v32  ;;  %v587_v15 = vsel %vm324_vm15, %v1169_v11, %v1170_v10  ;;  %v588_v18 = vsel %vm324_vm15, %v1170_v10, %v1169_v11  ;;  %v1015_v19 = vpack.c.bf16 %v626_v13, %v627_v14  ;;  %vm1199_vm15 = vmpackc.low %vm1548_vm10, %vm1366_vm14  ;;  %vm775_vm10 = vcmask 596992  }
 0x472   : > { %v1012_v34 = vpack.c.bf16 %v587_v15, %v588_v18  ;;  %v1187_v22 = vld [vmem:[#allocation2 + $0x40] ss:$8 sps:$4 sm:$0x1f]   ;;  %vm1203_vm2 = vmpackc.low %vm1544_vm8, %vm1366_vm14 }
 0x473   : > { %636 = vst [vmem:[#allocation2 + $0x8] sm:$0xff] %v1015_v19  ;;  %v1185_v21 = vld [vmem:[#allocation2 + $0x44] ss:$8 sps:$4 sm:$0x1f]   ;;  %v783_v24 = vand.u32 %v1187_v22, %v781_v20 }
 0x474   : > { %597 = vst [vmem:[#allocation2] sm:$0xff] %v1012_v34  ;;  %701 = vst.msk [vmem:[#allocation2 + $0x8] sm:$0xf] %vm1784_vm12, %v1362_v32  ;;  %v786_v23 = vand.u32 %v1185_v21, %v781_v20 }
 0x475   : > { %700 = vst.msk [vmem:[#allocation2] sm:$0xf] %vm1785_vm13, %v1362_v32 }
 0x476   : > { %794 = vmatprep.subr.bf16.mxu1 %v786_v23 }
 0x477   : > { %795 = vmatpush1.bf16.msra.mxu1 %v783_v24  ;;  %v1190_v33 = vld [vmem:[#allocation2 + $0x30] ss:$8 sps:$4 sm:$0xff]  }
 0x478   : > { %v1188_v25 = vld [vmem:[#allocation2 + $0x34] ss:$8 sps:$4 sm:$0xff]  }
 0x479   : > { %796 = vmatprep.subr.bf16.mxu1 %v1188_v25  ;;  %v718_v26 = vld [vmem:[#allocation2 + $0x10] sm:$0xff] }
 0x47a   : > { %v989_v32 = vcombine.high %v718_v26, %v1646_v41  ;;  %v988_v29 = vcombine.low %v718_v26, %v1646_v41 }
 0x47b   : > { %797 = vmatpush1.bf16.msra.mxu1 %v1190_v33  ;;  %v1191_v42 = vld [vmem:[#allocation2 + $0x4] ss:$8 sps:$4 sm:$0xff]  }
 0x47c   : > { %1201 = vmatprep.subr.msk.bf16.mxu1 %vm1199_vm15, %v1200_v27  ;;  %v1193_v35 = vld [vmem:[#allocation2] ss:$8 sps:$4 sm:$0xff]  }
 0x47f   : > { %1205 = vmatpush1.bf16.msk.msra.mxu1 %vm1203_vm2, %v1204_v28 }
 0x480   : > { %800 = vmatprep.subr.bf16.mxu1 %v989_v32 }
 0x483   : > { %801 = vmatpush1.bf16.msra.mxu1 %v988_v29 }
 0x484   : > { %802 = vmatprep.subr.bf16.mxu1 %v1191_v42 }
 0x487   : > { %803 = vmatpush1.bf16.msra.mxu1 %v1193_v35 }
 0x48a   : > { %996 = vmatmul.mubr.msk.bf16.vlgmr.msra.gmra.mxu1 %vm775_vm10, %v726_v17 }
 0x54a   : > { %v822_v36 = vpop.f32.mrf.mxu1 }
 0x54b   : > { %829 = vst [vmem:[%s211_s4] sm:$0x3] %v822_v36  ;;  %v838_v16 = vadd.f32 %v834_v39, %v822_v36  ;;  %842 = vst [vmem:[%s211_s4] sm:$0xc0] %v822_v36 }
 0x54c   : > { %v824_v30 = vpop.f32.mrf.mxu1 }
 0x54d   : > { %840 = vst [vmem:[%s211_s4] sm:$0x3c] %v838_v16  ;;  %830 = vst [vmem:[%s211_s4 + $0x8] sm:$0x3] %v824_v30  ;;  %v839_v37 = vadd.f32 %v835_v31, %v824_v30 }
 0x54e   : > { %843 = vst [vmem:[%s211_s4 + $0x8] sm:$0xc0] %v824_v30  ;;  %v826_v0 = vpop.f32.mrf.mxu1 }
 0x54f   : > { %841 = vst [vmem:[%s211_s4 + $0x8] sm:$0x3c] %v839_v37 }
 0x550   : > { %v827_v1 = vpop.f32.mrf.mxu1 }
 0x551   : > { %1299 = shalt.err (!%p1296_p12)
}
 0x552   : > { %s1300_s29 = scalar_lea.hbm %s1710_s11, 256  ;;  %s1304_s18 = scalar_lea.hbm %s1756_s3, 512 }
 0x553   : > { %p1301_p3 = scmp.ne.s32.totalorder %s1710_s11, %s1300_s29  ;;  %p1305_p5 = scmp.lt.s32.totalorder %s1710_s11, %s1756_s3 }
 0x554   : > { %p1306_p9 = scmp.lt.s32.totalorder %s1304_s18, %s1300_s29 }
 0x555   : > { %p1302_p7 = pnand %p1301_p3, %p1786_p0 }
 0x556   : > { %p1307_p11 = por %p1306_p9, %p1305_p5 }
 0x557   : > { %p1303_p10 = pneg %p1302_p7 }
 0x559   : > { %p1308_p13 = pnand %p1307_p11, %p1303_p10 }
 0x55b   : > { %1311 = shalt.err (!%p1308_p13)
}
 0x55c   : > { %1032 = dma.vmem_to_hbm [thread:$0]  (%p1786_p0), %s1712_s5, 256, %s1710_s11, %s845_s16  }
 0x55d PF: > { %s871_s25 = sand.u32 1, %s1342_s12   ;;  %p1787_p1 = scmp.ne.s32.totalorder %s1764_s19, 0 }
 0x55e   : > { %p1788_p2 = scmp.ge.s32.totalorder %s1354_s15, 2  ;;  %s872_s27 = scalar_lea.sflag [#allocation5], %s871_s25 }
 0x560   : > { %p1046_p4 = pnand %p1788_p2, %p1787_p1 }
 0x562   : > { %p1047_p6 = pneg %p1046_p4 }
 0x564   : > { %1337 = dma.done.wait (%p1047_p6), %s872_s27, 256  }
 0x565   : > { %1339 = vsyncadd (%p1047_p6), %s872_s27, 4294967040  ;;  %p17_p8 = scmp.ge.s32.totalorder %s1442_s26, 4   ;;  %s1789_s12 = smov %s1346_s13 }
 0x566   : > { %s1790_s13 = smov %s1350_s14  ;;  %s1791_s14 = smov %s1469_s8 }
 0x567   : > { %s1792_s15 = smov %s1442_s26  ;;  %19 = sbr.rel (!%p17_p8) target bundleno = 6 (0x6), region = 85 }
 0x56c   :  { %877 = vsyncpa [#allocation4], 1 }
 0x56d   :  { %879 = vsyncpa [#allocation4 + $0x1], 1 }
 0x56e   :  { %880 = vsyncpa [#allocation7], 1 }
 0x56f   :  { %881 = vsyncpa [#allocation5], 1 }
 0x570   :  { %883 = vsyncpa [#allocation5 + $0x1], 1 }

</bundles_post_ra>
